<compile_context>
chip_gen: v6e
topology: v6e:2x2x1
jax: 0.10.0
libtpu: 0.0.40
codegen_flags: <defaults>
</compile_context>

<pallas_src>
import jax
import jax.numpy as jnp
from jax.experimental import pallas as pl
from jax.experimental.pallas import tpu as pltpu


def mlp_kernel(x_ref, w1_ref, b1_ref, w2_ref, b2_ref, w3_ref, b3_ref, o_ref):
    # fc1 + relu  (bf16 MXU inputs, f32 accumulation)
    x = x_ref[...].astype(jnp.bfloat16)
    h1 = jnp.dot(x, w1_ref[...], preferred_element_type=jnp.float32)
    h1 = jnp.maximum(h1 + b1_ref[...], 0.0)
    # dropout (eval mode) == identity
    # fc2 + relu
    h2 = jnp.dot(h1.astype(jnp.bfloat16), w2_ref[...], preferred_element_type=jnp.float32)
    h2 = jnp.maximum(h2 + b2_ref[...], 0.0)
    # dropout (eval mode) == identity
    # fc3 (no activation); output slab is lane-dense (padded to a multiple of 128 columns)
    out = jnp.dot(h2.astype(jnp.bfloat16), w3_ref[...], preferred_element_type=jnp.float32)
    o_ref[...] = (out + b3_ref[...]).astype(o_ref.dtype)


def mlp_forward(x, w1, b1, w2, b2, w3, b3, *, batch_tile=128):
    """x: [B, in]; weights [in, out] (transposed from nn.Linear); biases [1, out]."""
    B, input_num = x.shape
    hid1 = w1.shape[1]
    hid2 = w2.shape[1]
    out_num = w3.shape[1]

    # --- lane-dense output: pad fc3 columns to a multiple of 128 ---
    out_pad = pl.cdiv(out_num, 128) * 128
    w3p = jnp.zeros((hid2, out_pad), jnp.float32).at[:, :out_num].set(w3.astype(jnp.float32))
    b3p = jnp.zeros((1, out_pad), jnp.float32).at[:, :out_num].set(b3.astype(jnp.float32))

    # --- bf16 weights (MXU-native): halves weight DMA + VMEM; accumulation stays f32 ---
    w1b = w1.astype(jnp.bfloat16)
    w2b = w2.astype(jnp.bfloat16)
    w3b = w3p.astype(jnp.bfloat16)
    b1f = b1.astype(jnp.float32)
    b2f = b2.astype(jnp.float32)
    b3f = b3p

    # --- batch tiling: stream row tiles through the grid, weights pinned resident ---
    tb = min(batch_tile, ((B + 7) // 8) * 8)          # multiple of 8 sublanes
    padded_b = pl.cdiv(B, tb) * tb
    num_tiles = padded_b // tb
    xp = jnp.zeros((padded_b, input_num), jnp.float32).at[:B].set(x.astype(jnp.float32))

    # Weights/biases: full-array block + constant block index -> DMA'd once, VMEM-resident.
    def resident(arr):
        return pl.BlockSpec(arr.shape, lambda i: (0, 0))

    flops = 2 * padded_b * (input_num * hid1 + hid1 * hid2 + hid2 * out_pad)
    bytes_accessed = (xp.size * 4
                      + w1b.size * 2 + w2b.size * 2 + w3b.size * 2
                      + (hid1 + hid2 + out_pad) * 4
                      + padded_b * out_pad * 4)

    out = pl.pallas_call(
        mlp_kernel,
        out_shape=jax.ShapeDtypeStruct((padded_b, out_pad), jnp.float32),
        grid=(num_tiles,),
        in_specs=[
            pl.BlockSpec((tb, input_num), lambda i: (i, 0)),   # x: streamed per batch tile
            resident(w1b), resident(b1f),
            resident(w2b), resident(b2f),
            resident(w3b), resident(b3f),
        ],
        out_specs=pl.BlockSpec((tb, out_pad), lambda i: (i, 0)),
        compiler_params=pltpu.CompilerParams(
            dimension_semantics=("parallel",)),                # v7x: shard batch over both TCs
        cost_estimate=pl.CostEstimate(
            flops=flops, transcendentals=0, bytes_accessed=bytes_accessed),
    )(xp, w1b, b1f, w2b, b2f, w3b, b3f)

    return out[:B, :out_num]


def init_linear(key, in_features, out_features):
    # Deterministic PyTorch-style uniform(-1/sqrt(in), 1/sqrt(in)) init.
    kw, kb = jax.random.split(key)
    bound = 1.0 / jnp.sqrt(jnp.float32(in_features))
    # stored transposed: [in, out]
    w = jax.random.uniform(kw, (in_features, out_features), jnp.float32, -bound, bound)
    b = jax.random.uniform(kb, (1, out_features), jnp.float32, -bound, bound)
    return w, b


if __name__ == "__main__":
    input_num = 8
    output_num = 4
    hidden1 = 256
    hidden2 = 256
    batch = 2

    key = jax.random.PRNGKey(0)
    kx, k1, k2, k3 = jax.random.split(key, 4)

    x = jax.random.normal(kx, (batch, input_num), jnp.float32)
    w1, b1 = init_linear(k1, input_num, hidden1)
    w2, b2 = init_linear(k2, hidden1, hidden2)
    w3, b3 = init_linear(k3, hidden2, output_num)

    out = mlp_forward(x, w1, b1, w2, b2, w3, b3)
    out = jax.block_until_ready(out)

    # Pure-JAX f32 reference; tolerance loosened for bf16 MXU inputs in the kernel.
    ref = jnp.maximum(x @ w1 + b1, 0.0)
    ref = jnp.maximum(ref @ w2 + b2, 0.0)
    ref = ref @ w3 + b3
    assert out.shape == (batch, output_num), out.shape
    err = jnp.max(jnp.abs(out - ref))
    assert jnp.allclose(out, ref, atol=3e-2, rtol=3e-2), f"max abs err {err}"

    print("KERNEL_OK")
</pallas_src>

<mosaic_0001>
module attributes {stable_mosaic.version = 11 : i64} {
  func.func @mlp_kernel(%arg0: i32, %arg1: memref<8x8xf32, #tpu.memory_space<vmem>>, %arg2: memref<8x256xbf16, #tpu.memory_space<vmem>>, %arg3: memref<1x256xf32, #tpu.memory_space<vmem>>, %arg4: memref<256x256xbf16, #tpu.memory_space<vmem>>, %arg5: memref<1x256xf32, #tpu.memory_space<vmem>>, %arg6: memref<256x128xbf16, #tpu.memory_space<vmem>>, %arg7: memref<1x128xf32, #tpu.memory_space<vmem>>, %arg8: memref<8x128xf32, #tpu.memory_space<vmem>>) attributes {dimension_semantics = [#tpu.dimension_semantics<parallel>], iteration_bounds = array<i64: 1>, scalar_prefetch = 0 : i64, scratch_operands = 0 : i64, tpu.core_type = #tpu.core_type<tc>, window_params = [{transform_indices = @transform_0, window_bounds = array<i64: 8, 8>}, {pipeline_mode = #tpu.pipeline_mode<synchronous>, transform_indices = @transform_1, window_bounds = array<i64: 8, 256>}, {pipeline_mode = #tpu.pipeline_mode<synchronous>, transform_indices = @transform_2, window_bounds = array<i64: 1, 256>}, {pipeline_mode = #tpu.pipeline_mode<synchronous>, transform_indices = @transform_3, window_bounds = array<i64: 256, 256>}, {pipeline_mode = #tpu.pipeline_mode<synchronous>, transform_indices = @transform_4, window_bounds = array<i64: 1, 256>}, {pipeline_mode = #tpu.pipeline_mode<synchronous>, transform_indices = @transform_5, window_bounds = array<i64: 256, 128>}, {pipeline_mode = #tpu.pipeline_mode<synchronous>, transform_indices = @transform_6, window_bounds = array<i64: 1, 128>}, {transform_indices = @transform_7, window_bounds = array<i64: 8, 128>}]} {
    %c0 = arith.constant 0 : index
    %c0_0 = arith.constant 0 : index
    %0 = vector.load %arg1[%c0, %c0_0] : memref<8x8xf32, #tpu.memory_space<vmem>>, vector<8x8xf32>
    %1 = arith.truncf %0 : vector<8x8xf32> to vector<8x8xbf16>
    %c0_1 = arith.constant 0 : index
    %c0_2 = arith.constant 0 : index
    %2 = vector.load %arg2[%c0_1, %c0_2] : memref<8x256xbf16, #tpu.memory_space<vmem>>, vector<8x256xbf16>
    %cst = arith.constant dense<0.000000e+00> : vector<8x256xf32>
    %3 = tpu.matmul %1, %2, %cst {dimension_numbers = #tpu.dot_dimension_numbers<[1], [0], [0], [1], [0, 0, 1, 1], [], []>} : vector<8x8xbf16>, vector<8x256xbf16>, vector<8x256xf32> -> vector<8x256xf32>
    %c0_3 = arith.constant 0 : index
    %c0_4 = arith.constant 0 : index
    %4 = vector.load %arg3[%c0_3, %c0_4] : memref<1x256xf32, #tpu.memory_space<vmem>>, vector<1x256xf32>
    %5 = vector.broadcast %4 : vector<1x256xf32> to vector<8x256xf32>
    %6 = arith.addf %3, %5 : vector<8x256xf32>
    %cst_5 = arith.constant 0.000000e+00 : f32
    %7 = vector.broadcast %cst_5 : f32 to vector<8x256xf32>
    %8 = arith.maximumf %6, %7 : vector<8x256xf32>
    %9 = arith.truncf %8 : vector<8x256xf32> to vector<8x256xbf16>
    %c0_6 = arith.constant 0 : index
    %c0_7 = arith.constant 0 : index
    %10 = vector.load %arg4[%c0_6, %c0_7] : memref<256x256xbf16, #tpu.memory_space<vmem>>, vector<256x256xbf16>
    %cst_8 = arith.constant dense<0.000000e+00> : vector<8x256xf32>
    %11 = tpu.matmul %9, %10, %cst_8 {dimension_numbers = #tpu.dot_dimension_numbers<[1], [0], [0], [1], [0, 0, 1, 1], [], []>} : vector<8x256xbf16>, vector<256x256xbf16>, vector<8x256xf32> -> vector<8x256xf32>
    %c0_9 = arith.constant 0 : index
    %c0_10 = arith.constant 0 : index
    %12 = vector.load %arg5[%c0_9, %c0_10] : memref<1x256xf32, #tpu.memory_space<vmem>>, vector<1x256xf32>
    %13 = vector.broadcast %12 : vector<1x256xf32> to vector<8x256xf32>
    %14 = arith.addf %11, %13 : vector<8x256xf32>
    %cst_11 = arith.constant 0.000000e+00 : f32
    %15 = vector.broadcast %cst_11 : f32 to vector<8x256xf32>
    %16 = arith.maximumf %14, %15 : vector<8x256xf32>
    %17 = arith.truncf %16 : vector<8x256xf32> to vector<8x256xbf16>
    %c0_12 = arith.constant 0 : index
    %c0_13 = arith.constant 0 : index
    %18 = vector.load %arg6[%c0_12, %c0_13] : memref<256x128xbf16, #tpu.memory_space<vmem>>, vector<256x128xbf16>
    %cst_14 = arith.constant dense<0.000000e+00> : vector<8x128xf32>
    %19 = tpu.matmul %17, %18, %cst_14 {dimension_numbers = #tpu.dot_dimension_numbers<[1], [0], [0], [1], [0, 0, 1, 1], [], []>} : vector<8x256xbf16>, vector<256x128xbf16>, vector<8x128xf32> -> vector<8x128xf32>
    %c0_15 = arith.constant 0 : index
    %c0_16 = arith.constant 0 : index
    %20 = vector.load %arg7[%c0_15, %c0_16] : memref<1x128xf32, #tpu.memory_space<vmem>>, vector<1x128xf32>
    %21 = vector.broadcast %20 : vector<1x128xf32> to vector<8x128xf32>
    %22 = arith.addf %19, %21 : vector<8x128xf32>
    %c0_17 = arith.constant 0 : index
    %c0_18 = arith.constant 0 : index
    %23 = vector.load %arg8[%c0_17, %c0_18] : memref<8x128xf32, #tpu.memory_space<vmem>>, vector<8x128xf32>
    tpu.vector_store %arg8[%c0_17, %c0_18], %22 {strides = array<i32>} : memref<8x128xf32, #tpu.memory_space<vmem>>, vector<8x128xf32>,
    return
  }
  func.func @transform_0(%arg0: i32) -> (i32, i32) {
    %c0_i32 = arith.constant 0 : i32
    %c0_i32_0 = arith.constant 0 : i32
    return %arg0, %c0_i32 : i32, i32
  }
  func.func @transform_1(%arg0: i32) -> (i32, i32) {
    %c0_i32 = arith.constant 0 : i32
    %c0_i32_0 = arith.constant 0 : i32
    %c0_i32_1 = arith.constant 0 : i32
    return %c0_i32, %c0_i32_0 : i32, i32
  }
  func.func @transform_2(%arg0: i32) -> (i32, i32) {
    %c0_i32 = arith.constant 0 : i32
    %c0_i32_0 = arith.constant 0 : i32
    %c0_i32_1 = arith.constant 0 : i32
    return %c0_i32, %c0_i32_0 : i32, i32
  }
  func.func @transform_3(%arg0: i32) -> (i32, i32) {
    %c0_i32 = arith.constant 0 : i32
    %c0_i32_0 = arith.constant 0 : i32
    %c0_i32_1 = arith.constant 0 : i32
    return %c0_i32, %c0_i32_0 : i32, i32
  }
  func.func @transform_4(%arg0: i32) -> (i32, i32) {
    %c0_i32 = arith.constant 0 : i32
    %c0_i32_0 = arith.constant 0 : i32
    %c0_i32_1 = arith.constant 0 : i32
    return %c0_i32, %c0_i32_0 : i32, i32
  }
  func.func @transform_5(%arg0: i32) -> (i32, i32) {
    %c0_i32 = arith.constant 0 : i32
    %c0_i32_0 = arith.constant 0 : i32
    %c0_i32_1 = arith.constant 0 : i32
    return %c0_i32, %c0_i32_0 : i32, i32
  }
  func.func @transform_6(%arg0: i32) -> (i32, i32) {
    %c0_i32 = arith.constant 0 : i32
    %c0_i32_0 = arith.constant 0 : i32
    %c0_i32_1 = arith.constant 0 : i32
    return %c0_i32, %c0_i32_0 : i32, i32
  }
  func.func @transform_7(%arg0: i32) -> (i32, i32) {
    %c0_i32 = arith.constant 0 : i32
    %c0_i32_0 = arith.constant 0 : i32
    return %arg0, %c0_i32 : i32, i32
  }
}

</mosaic_0001>

<bundles_post_ra>
// kernel: tpu_custom_call.1
= control target key start
LH: loop header
LB: loop body
LE: loop exit
PB: predicated region body
PF: predicated region fallthrough
CT: control target
= control target key end

     0   :  { %12 = vsyncpa [#allocation3], 0  ;;  %s930_s0 = inlined_call_operand.hbm [shape: f32[8,8], index: 0, kind: input, shape index: {}]   ;;  %s931_s1 = inlined_call_operand.hbm [shape: bf16[8,256], index: 1, kind: input, shape index: {}]   ;;  %s932_s2 = inlined_call_operand.vmem [shape: f32[1,256], index: 2, kind: input, shape index: {}]   ;;  %s933_s3 = inlined_call_operand.hbm [shape: bf16[256,256], index: 3, kind: input, shape index: {}]   ;;  %s934_s4 = inlined_call_operand.vmem [shape: f32[1,256], index: 4, kind: input, shape index: {}]   ;;  %s935_s5 = inlined_call_operand.hbm [shape: bf16[256,128], index: 5, kind: input, shape index: {}]   ;;  %s936_s6 = inlined_call_operand.vmem [shape: f32[1,128], index: 6, kind: input, shape index: {}]   ;;  %s937_s7 = inlined_call_operand.hbm [shape: f32[8,128], index: 7, kind: output, shape index: {}]  }
   0x1   :  { %13 = vsyncpa [#allocation6], 0 }
   0x2   :  { %14 = vsyncpa [#allocation9], 0 }
   0x3   :  { %15 = vsyncpa [#allocation4], 0  ;;  %s856_s24 = smov [#allocation5]   ;;  %s857_s26 = smov [#allocation2]  }
   0x4   :  { %s32_s25 = sshll.u32 %s856_s24, 4  ;;  %s22_s27 = sshll.u32 %s857_s26, 4  ;;  %s33_s25 = int_to_ptr.vmem [resolvable:$true] %s32_s25  ;;  %s23_s27 = int_to_ptr.vmem [resolvable:$true] %s22_s27 }
   0x5   :  { %s756_s28 = scalar_lea.vmem %s33_s25, 128  ;;  %p761_p1 = scmp.lt.s32.totalorder %s33_s25, %s33_s25 }
   0x6   :  { %p757_p0 = scmp.ne.s32.totalorder %s33_s25, %s756_s28  ;;  %p762_p2 = scmp.lt.s32.totalorder %s756_s28, %s756_s28 }
   0x8   :  { %p763_p3 = por %p762_p2, %p761_p1 }
   0xa   :  { %p764_p4 = pnand %p763_p3, %p757_p0 }
   0xc   :  { %767 = shalt.err (!%p764_p4)
}
   0xd   :  { %35 = dma.hbm_to_vmem [thread:$0]  %s931_s1, 128, %s33_s25, [#allocation6]  }
   0xe   :  { %s776_s8 = scalar_lea.vmem %s23_s27, 128  ;;  %p781_p6 = scmp.lt.s32.totalorder %s23_s27, %s23_s27 }
   0xf   :  { %p777_p5 = scmp.ne.s32.totalorder %s23_s27, %s776_s8  ;;  %p782_p7 = scmp.lt.s32.totalorder %s776_s8, %s776_s8 }
  0x11   :  { %p783_p8 = por %p782_p7, %p781_p6 }
  0x13   :  { %p784_p9 = pnand %p783_p8, %p777_p5 }
  0x15   :  { %787 = shalt.err (!%p784_p9)
}
  0x16   :  { %25 = dma.hbm_to_vmem [thread:$0]  %s930_s0, 128, %s23_s27, [#allocation3]  }
  0x17   :  { %s858_s11 = smov [#allocation7]  }
  0x18   :  { %s43_s12 = sshll.u32 %s858_s11, 4  ;;  %s44_s12 = int_to_ptr.vmem [resolvable:$true] %s43_s12 }
  0x19   :  { %s796_s13 = scalar_lea.vmem %s44_s12, 4096  ;;  %p801_p11 = scmp.lt.s32.totalorder %s44_s12, %s44_s12 }
  0x1a   :  { %p797_p10 = scmp.ne.s32.totalorder %s44_s12, %s796_s13  ;;  %p802_p12 = scmp.lt.s32.totalorder %s796_s13, %s796_s13 }
  0x1c   :  { %p803_p13 = por %p802_p12, %p801_p11 }
  0x1e   :  { %p804_p0 = pnand %p803_p13, %p797_p10 }
  0x20   :  { %807 = shalt.err (!%p804_p0)
}
  0x21   :  { %s859_s1 = smov 128   ;;  %s860_s14 = smov 8  }
  0x22   :  { %49 = dma.hbm_to_vmem [thread:$0]  %s933_s3, 4096, %s44_s12, [#allocation6], %s859_s1, %s859_s1, %s860_s14  }
  0x23   :  { %s861_s17 = smov [#allocation8]  }
  0x24   :  { %s57_s18 = sshll.u32 %s861_s17, 4  ;;  %s58_s18 = int_to_ptr.vmem [resolvable:$true] %s57_s18 }
  0x25   :  { %s816_s0 = scalar_lea.vmem %s58_s18, 2048  ;;  %p821_p2 = scmp.lt.s32.totalorder %s58_s18, %s58_s18 }
  0x26   :  { %p817_p1 = scmp.ne.s32.totalorder %s58_s18, %s816_s0  ;;  %p822_p3 = scmp.lt.s32.totalorder %s816_s0, %s816_s0 }
  0x28   :  { %p823_p4 = por %p822_p3, %p821_p2 }
  0x2a   :  { %p824_p5 = pnand %p823_p4, %p817_p1 }
  0x2c   :  { %827 = shalt.err (!%p824_p5)
}
  0x2d   :  { %s862_s19 = smov 64   ;;  %s863_s20 = smov 4  }
  0x2e   :  { %63 = dma.hbm_to_vmem [thread:$0]  %s935_s5, 2048, %s58_s18, [#allocation9], %s862_s19, %s862_s19, %s863_s20  }
  0x2f   :  { %848 = dma.done.wait [#allocation3], 128  }
  0x30   :  { %849 = vsyncadd [#allocation3], 4294967168 }
  0x31   :  { %850 = dma.done.wait [#allocation6], 4224  }
  0x32   :  { %851 = vsyncadd [#allocation6], 4294963072 }
  0x33   :  { %852 = dma.done.wait [#allocation9], 2048  }
  0x34   :  { %853 = vsyncadd [#allocation9], 4294965248  ;;  %v864_v0 = vmov 0   ;;  %v81_v1 = vld [vmem:[#allocation5] sm:$0xff]  ;;  %vm103_vm0 = vcmask 1043456   ;;  %v79_v2 = vld [vmem:[#allocation2] sm:$0xff]  ;;  %v84_v51 = vlaneseq }
  0x35   :  { %142 = vmatprep.mubr.bf16.mxu0 %v864_v0  ;;  %v598_v3 = vcombine.high %v81_v1, %v81_v1  ;;  %v597_v4 = vcombine.low %v81_v1, %v81_v1  ;;  %v684_v5 = vld [vmem:[#allocation7 + $0x74] ss:$8 sps:$4 sm:$0xff]   ;;  %v686_v6 = vld [vmem:[#allocation7 + $0x70] ss:$8 sps:$4 sm:$0xff]   ;;  %v687_v7 = vld [vmem:[#allocation7 + $0x64] ss:$8 sps:$4 sm:$0xff]   ;;  %v80_v9 = vpack.c.bf16 %v79_v2, %v79_v2 }
  0x36   :  { %359 = vmatprep.subr.bf16.mxu1 %v684_v5  ;;  %vm99_vm1 = vcmask 64512   ;;  %v689_v10 = vld [vmem:[#allocation7 + $0x60] ss:$8 sps:$4 sm:$0xff]   ;;  %v690_v11 = vld [vmem:[#allocation7 + $0x54] ss:$8 sps:$4 sm:$0xff]   ;;  %v85_v52 = vshrl.u32 %v84_v51, 7 }
  0x37   :  { %599 = vmatprep.subr.msk.bf16.mxu0 %vm103_vm0, %v598_v3  ;;  %v105_v8 = vsel %vm103_vm0, %v597_v4, 0  ;;  %360 = vmatpush1.bf16.msra.mxu1 %v686_v6  ;;  %v692_v12 = vld [vmem:[#allocation7 + $0x50] ss:$8 sps:$4 sm:$0xff]   ;;  %v693_v13 = vld [vmem:[#allocation7 + $0x44] ss:$8 sps:$4 sm:$0xff]  }
  0x38   :  { %125 = vmatpush1.bf16.msra.mxu0 %v105_v8  ;;  %361 = vmatprep.subr.bf16.mxu1 %v687_v7  ;;  %v695_v14 = vld [vmem:[#allocation7 + $0x40] ss:$8 sps:$4 sm:$0xff]   ;;  %v696_v15 = vld [vmem:[#allocation7 + $0x34] ss:$8 sps:$4 sm:$0xff]   ;;  %v698_v16 = vld [vmem:[#allocation7 + $0x30] ss:$8 sps:$4 sm:$0xff]  }
  0x39   :  { %v699_v17 = vld [vmem:[#allocation7 + $0x24] ss:$8 sps:$4 sm:$0xff]   ;;  %v701_v18 = vld [vmem:[#allocation7 + $0x20] ss:$8 sps:$4 sm:$0xff]   ;;  %v702_v19 = vld [vmem:[#allocation7 + $0x14] ss:$8 sps:$4 sm:$0xff]  }
  0x3a   :  { %v704_v20 = vld [vmem:[#allocation7 + $0x10] ss:$8 sps:$4 sm:$0xff]   ;;  %v705_v21 = vld [vmem:[#allocation7 + $0x4] ss:$8 sps:$4 sm:$0xff]   ;;  %v707_v22 = vld [vmem:[#allocation7] ss:$8 sps:$4 sm:$0xff]  }
  0x3b   :  { %600 = vmatmul.mubr.msk.bf16.vlgmr.msra.gmra.mxu0 %vm99_vm1, %v80_v9  ;;  %362 = vmatpush1.bf16.msra.mxu1 %v689_v10  ;;  %v708_v23 = vld [vmem:[#allocation7 + $0xf4] ss:$8 sps:$4 sm:$0xff]   ;;  %v710_v24 = vld [vmem:[#allocation7 + $0xf0] ss:$8 sps:$4 sm:$0xff]   ;;  %v711_v25 = vld [vmem:[#allocation7 + $0xe4] ss:$8 sps:$4 sm:$0xff]  }
  0x3c   :  { %363 = vmatprep.subr.bf16.mxu1 %v690_v11  ;;  %v713_v26 = vld [vmem:[#allocation7 + $0xe0] ss:$8 sps:$4 sm:$0xff]   ;;  %v714_v27 = vld [vmem:[#allocation7 + $0xd4] ss:$8 sps:$4 sm:$0xff]   ;;  %v716_v28 = vld [vmem:[#allocation7 + $0xd0] ss:$8 sps:$4 sm:$0xff]  }
  0x3d   :  { %v717_v29 = vld [vmem:[#allocation7 + $0xc4] ss:$8 sps:$4 sm:$0xff]   ;;  %v719_v30 = vld [vmem:[#allocation7 + $0xc0] ss:$8 sps:$4 sm:$0xff]   ;;  %v720_v31 = vld [vmem:[#allocation7 + $0xb4] ss:$8 sps:$4 sm:$0xff]  }
  0x3e   :  { %v722_v32 = vld [vmem:[#allocation7 + $0xb0] ss:$8 sps:$4 sm:$0xff]   ;;  %v723_v33 = vld [vmem:[#allocation7 + $0xa4] ss:$8 sps:$4 sm:$0xff]   ;;  %v725_v34 = vld [vmem:[#allocation7 + $0xa0] ss:$8 sps:$4 sm:$0xff]  }
  0x3f   :  { %364 = vmatpush1.bf16.msra.mxu1 %v692_v12  ;;  %v726_v35 = vld [vmem:[#allocation7 + $0x94] ss:$8 sps:$4 sm:$0xff]   ;;  %v728_v36 = vld [vmem:[#allocation7 + $0x90] ss:$8 sps:$4 sm:$0xff]   ;;  %v729_v37 = vld [vmem:[#allocation7 + $0x84] ss:$8 sps:$4 sm:$0xff]  }
  0x40   :  { %365 = vmatprep.subr.bf16.mxu1 %v693_v13  ;;  %v731_v38 = vld [vmem:[#allocation7 + $0x80] ss:$8 sps:$4 sm:$0xff]   ;;  %v732_v39 = vld [vmem:[#allocation8 + $0x78] sm:$0xff]   ;;  %v734_v41 = vld [vmem:[#allocation8 + $0x70] sm:$0xff]   ;;  %v86_v53 = vsub.s32 0, %v85_v52  ;;  %v90_v55 = vsub.s32 1, %v85_v52 }
  0x41   :  { %v733_v40 = vld [vmem:[#allocation8 + $0x38] sm:$0xff]   ;;  %650 = vmatprep.subr.bf16.mxu0 %v732_v39  ;;  %v735_v42 = vld [vmem:[#allocation8 + $0x30] sm:$0xff]   ;;  %v736_v43 = vld [vmem:[#allocation8 + $0x68] sm:$0xff]  }
  0x42   :  { %651 = vmatpush3.bf16.msra.mxu0 %v733_v40  ;;  %v737_v44 = vld [vmem:[#allocation8 + $0x28] sm:$0xff]   ;;  %v738_v45 = vld [vmem:[#allocation8 + $0x60] sm:$0xff]   ;;  %v740_v47 = vld [vmem:[#allocation8 + $0x58] sm:$0xff]  }
  0x43   :  { %366 = vmatpush1.bf16.msra.mxu1 %v695_v14  ;;  %652 = vmatprep.subr.bf16.mxu0 %v734_v41  ;;  %v739_v46 = vld [vmem:[#allocation8 + $0x20] sm:$0xff]   ;;  %v741_v48 = vld [vmem:[#allocation8 + $0x18] sm:$0xff]   ;;  %v742_v49 = vld [vmem:[#allocation8 + $0x50] sm:$0xff]  }
  0x44   :  { %367 = vmatprep.subr.bf16.mxu1 %v696_v15  ;;  %v743_v50 = vld [vmem:[#allocation8 + $0x10] sm:$0xff]   ;;  %v744_v4 = vld [vmem:[#allocation8 + $0x48] sm:$0xff]   ;;  %v746_v6 = vld [vmem:[#allocation8 + $0x40] sm:$0xff]  }
  0x45   :  { %v82_v54 = vld [vmem:[%s932_s2] sm:$0x3]  ;;  %v745_v5 = vld [vmem:[#allocation8 + $0x8] sm:$0xff]   ;;  %v747_v7 = vld [vmem:[#allocation8] sm:$0xff]  }
  0x46   :  { %653 = vmatpush3.bf16.msra.mxu0 %v735_v42  ;;  %v87_v56 = vrot.slane %v82_v54, %v86_v53  ;;  %v91_v57 = vrot.slane %v82_v54, %v90_v55  ;;  %v187_v8 = vld [vmem:[%s934_s4] sm:$0x3]  ;;  %s865_s4 = smov [#allocation10]  }
  0x47   :  { %368 = vmatpush1.bf16.msra.mxu1 %v698_v16  ;;  %654 = vmatprep.subr.bf16.mxu0 %v736_v43  ;;  %v192_v9 = vrot.slane %v187_v8, %v86_v53  ;;  %v196_v10 = vrot.slane %v187_v8, %v90_v55  ;;  %s586_s26 = sshll.u32 %s865_s4, 4  ;;  %s587_s26 = int_to_ptr.vmem [resolvable:$true] %s586_s26 }
  0x48   :  { %369 = vmatprep.subr.bf16.mxu1 %v699_v17  ;;  %s828_s27 = scalar_lea.vmem %s587_s26, 128  ;;  %p833_p7 = scmp.lt.s32.totalorder %s587_s26, %s587_s26 }
  0x49   :  { %p829_p6 = scmp.ne.s32.totalorder %s587_s26, %s828_s27  ;;  %p834_p8 = scmp.lt.s32.totalorder %s828_s27, %s828_s27 }
  0x4a   :  { %655 = vmatpush3.bf16.msra.mxu0 %v737_v44 }
  0x4b   :  { %370 = vmatpush1.bf16.msra.mxu1 %v701_v18  ;;  %656 = vmatprep.subr.bf16.mxu0 %v738_v45  ;;  %p835_p9 = por %p834_p8, %p833_p7 }
  0x4c   :  { %371 = vmatprep.subr.bf16.mxu1 %v702_v19 }
  0x4d   :  { %p836_p10 = pnand %p835_p9, %p829_p6 }
  0x4e   :  { %657 = vmatpush3.bf16.msra.mxu0 %v739_v46 }
  0x4f   :  { %372 = vmatpush1.bf16.msra.mxu1 %v704_v20  ;;  %658 = vmatprep.subr.bf16.mxu0 %v740_v47 }
  0x50   :  { %373 = vmatprep.subr.bf16.mxu1 %v705_v21 }
  0x52   :  { %659 = vmatpush3.bf16.msra.mxu0 %v741_v48 }
  0x53   :  { %374 = vmatpush1.bf16.msra.mxu1 %v707_v22  ;;  %660 = vmatprep.subr.bf16.mxu0 %v742_v49  ;;  %v633_v22 = vld [vmem:[%s936_s6] ss:$0 sm:$0xff] }
  0x54   :  { %375 = vmatprep.subr.bf16.mxu1 %v708_v23 }
  0x56   :  { %661 = vmatpush3.bf16.msra.mxu0 %v743_v50 }
  0x57   :  { %376 = vmatpush2.bf16.msra.mxu1 %v710_v24  ;;  %662 = vmatprep.subr.bf16.mxu0 %v744_v4 }
  0x58   :  { %377 = vmatprep.subr.bf16.mxu1 %v711_v25 }
  0x5a   :  { %663 = vmatpush3.bf16.msra.mxu0 %v745_v5 }
  0x5b   :  { %378 = vmatpush2.bf16.msra.mxu1 %v713_v26  ;;  %664 = vmatprep.subr.bf16.mxu0 %v746_v6 }
  0x5c   :  { %379 = vmatprep.subr.bf16.mxu1 %v714_v27 }
  0x5e   :  { %665 = vmatpush3.bf16.msra.mxu0 %v747_v7 }
  0x5f   :  { %380 = vmatpush2.bf16.msra.mxu1 %v716_v28 }
  0x60   :  { %381 = vmatprep.subr.bf16.mxu1 %v717_v29 }
  0x63   :  { %382 = vmatpush2.bf16.msra.mxu1 %v719_v30 }
  0x64   :  { %383 = vmatprep.subr.bf16.mxu1 %v720_v31 }
  0x67   :  { %384 = vmatpush2.bf16.msra.mxu1 %v722_v32 }
  0x68   :  { %385 = vmatprep.subr.bf16.mxu1 %v723_v33 }
  0x6b   :  { %386 = vmatpush2.bf16.msra.mxu1 %v725_v34 }
  0x6c   :  { %387 = vmatprep.subr.bf16.mxu1 %v726_v35 }
  0x6f   :  { %388 = vmatpush2.bf16.msra.mxu1 %v728_v36 }
  0x70   :  { %389 = vmatprep.subr.bf16.mxu1 %v729_v37 }
  0x73   :  { %390 = vmatpush2.bf16.msra.mxu1 %v731_v38 }
  0xfb   :  { %v144_v58 = vpop.f32.mrf.mxu0 }
  0xfc   :  { %v145_v59 = vadd.f32 %v144_v58, %v87_v56 }
  0xfd   :  { %v146_v60 = vpop.f32.mrf.mxu0 }
  0xfe   :  { %v147_v61 = vadd.f32 %v146_v60, %v91_v57  ;;  %v151_v62 = vmax.f32 %v145_v59, 0.0 }
  0xff   :  { %v148_v63 = vpop.f32.mrf.mxu0 }
 0x100   :  { %v152_v0 = vmax.f32 %v147_v61, 0.0  ;;  %v153_v3 = vpack.c.bf16 %v151_v62, %v151_v62 }
 0x101   :  { %v149_v1 = vpop.f32.mrf.mxu0 }
 0x102   :  { %v154_v2 = vpack.c.bf16 %v152_v0, %v152_v0 }
 0x104   :  { %391 = vmatprep.mubr.bf16.mxu1 %v154_v2 }
 0x105   :  { %392 = vmatmul.mubr.bf16.vlgmr.msra.gmra.mxu1 %v153_v3 }
 0x1c5   :  { %v393_v11 = vpop.f32.mrf.mxu1 }
 0x1c6   :  { %v394_v12 = vadd.f32 %v393_v11, %v192_v9 }
 0x1c7   :  { %v395_v13 = vpop.f32.mrf.mxu1 }
 0x1c8   :  { %v396_v14 = vadd.f32 %v395_v13, %v196_v10  ;;  %v400_v15 = vmax.f32 %v394_v12, 0.0 }
 0x1c9   :  { %v397_v16 = vpop.f32.mrf.mxu1 }
 0x1ca   :  { %v401_v17 = vmax.f32 %v396_v14, 0.0  ;;  %v402_v20 = vpack.c.bf16 %v400_v15, %v400_v15 }
 0x1cb   :  { %v398_v18 = vpop.f32.mrf.mxu1 }
 0x1cc   :  { %v403_v19 = vpack.c.bf16 %v401_v17, %v401_v17 }
 0x1ce   :  { %571 = vmatprep.mubr.bf16.mxu0 %v403_v19 }
 0x1cf   :  { %572 = vmatmul.mubr.bf16.vlgmr.msra.gmra.mxu0 %v402_v20 }
 0x28f   :  { %v666_v21 = vpop.f32.mrf.mxu0 }
 0x291   :  { %v667_v23 = vpop.f32.mrf.mxu0 }
 0x292   :  { %v668_v24 = vadd.f32 %v667_v23, %v666_v21 }
 0x293   :  { %v669_v25 = vpop.f32.mrf.mxu0 }
 0x294   :  { %v574_v26 = vadd.f32 %v668_v24, %v633_v22 }
 0x295   :  { %v670_v27 = vpop.f32.mrf.mxu0 }
 0x296   :  { %579 = vst [vmem:[#allocation10] sm:$0xff] %v574_v26 }
 0x297   :  { %839 = shalt.err (!%p836_p10)
}
 0x298   :  { %589 = dma.vmem_to_hbm [thread:$0]  %s587_s26, 128, %s937_s7, [#allocation4]  }
 0x299   :  { %854 = dma.done.wait [#allocation4], 128  }
 0x29a   :  { %855 = vsyncadd [#allocation4], 4294967168 }
 0x29b   :  { %593 = vsyncpa [#allocation3], 1 }
 0x29c   :  { %594 = vsyncpa [#allocation6], 1 }
 0x29d   :  { %595 = vsyncpa [#allocation9], 1 }
 0x29e   :  { %596 = vsyncpa [#allocation4], 1 }

</bundles_post_ra>
